<compile_context>
chip_gen: v6e
topology: v6e:2x2x1
jax: 0.10.0
libtpu: 0.0.40
codegen_flags: <defaults>
</compile_context>

<pallas_src>
import jax
import jax.numpy as jnp
from jax.experimental import pallas as pl
from jax.experimental.pallas import tpu as pltpu

_INV_SQRT2 = 0.7071067811865476


def _gelu_exact(h):
    # exact (erf-based) GELU in f32, matching torch F.gelu default
    return 0.5 * h * (1.0 + jax.lax.erf(h * _INV_SQRT2))


def mlp_kernel_direct(x_ref, w1_ref, b1_ref, w2_ref, b2_ref, o_ref):
    """f32 output: the resident output block IS the accumulator."""
    j = pl.program_id(1)

    @pl.when(j == 0)
    def _():
        o_ref[...] = jnp.zeros_like(o_ref)

    h = jnp.dot(x_ref[...], w1_ref[...], preferred_element_type=jnp.float32)
    h = _gelu_exact(h + b1_ref[...].astype(jnp.float32))
    o_ref[...] += jnp.dot(h.astype(w2_ref.dtype), w2_ref[...],
                          preferred_element_type=jnp.float32)

    @pl.when(j == pl.num_programs(1) - 1)
    def _():
        o_ref[...] = o_ref[...] + b2_ref[...].astype(jnp.float32)


def mlp_kernel_acc(x_ref, w1_ref, b1_ref, w2_ref, b2_ref, o_ref, acc_ref):
    """Low-precision output: f32 scratch accumulator, cast once at finalize."""
    j = pl.program_id(1)

    @pl.when(j == 0)
    def _():
        acc_ref[...] = jnp.zeros_like(acc_ref)

    h = jnp.dot(x_ref[...], w1_ref[...], preferred_element_type=jnp.float32)
    h = _gelu_exact(h + b1_ref[...].astype(jnp.float32))
    acc_ref[...] += jnp.dot(h.astype(w2_ref.dtype), w2_ref[...],
                            preferred_element_type=jnp.float32)

    @pl.when(j == pl.num_programs(1) - 1)
    def _():
        o_ref[...] = (acc_ref[...]
                      + b2_ref[...].astype(jnp.float32)).astype(o_ref.dtype)


def _round_up(a, b):
    return ((a + b - 1) // b) * b


def _tn_candidates(hidden):
    """tn values dividing `hidden`, lane-aligned, descending (hidden first)."""
    cands = [hidden]
    if hidden % 128 == 0:
        t = hidden - 128
        while t >= 128:
            if hidden % t == 0:
                cands.append(t)
            t -= 128
    return cands


def _vmem_bytes(tm, tn, C, isz, wsz, osz, use_acc):
    """Conservative per-core VMEM footprint for a (tm, tn) tiling."""
    est = 2 * tm * C * isz                    # x tile (double-buffered)
    est += 2 * tm * C * osz                   # out tile (double-buffered)
    est += 2 * (C * tn + tn) * wsz            # W_fc slice + b_fc slice
    est += 2 * (tn * C + C) * wsz             # W_proj slice + b_proj
    if use_acc:
        est += tm * C * 4                     # f32 accumulator scratch
    est += tm * tn * (4 + wsz)                # f32 hidden intermediate (+ cast copy)
    return est


def mlp_pallas(x2d, w_fc, b_fc, w_proj, b_proj):
    """x2d: (M, n_embed); w_fc: (n_embed, 4n); w_proj: (4n, n_embed)."""
    M, C = x2d.shape
    hidden = w_fc.shape[1]
    out_dtype = x2d.dtype
    wdt = w_fc.dtype

    # Cast activations to the weight dtype once, outside the kernel (halves x
    # HBM traffic and removes a per-hidden-slice VPU cast of the resident tile).
    if x2d.dtype != wdt:
        x2d = x2d.astype(wdt)

    isz = wdt.itemsize
    wsz = isz
    osz = out_dtype.itemsize
    # Sublane packing multiple of the activation dtype.
    rm = {4: 8, 2: 16, 1: 32}.get(isz, 8)

    # Generation-aware VMEM budget (v5e/v6e: 128 MiB physical; v7x: 64 MiB).
    vmem_cap = 128 << 20
    try:
        vmem_cap = int(getattr(pltpu.get_tpu_info(), "vmem_capacity_bytes",
                               vmem_cap))
    except Exception:
        pass
    if vmem_cap >= (96 << 20):
        gen_cap = 100 << 20                              # v5e / v6e
    else:
        gen_cap = max(32 << 20, vmem_cap - (8 << 20))    # v7x (~56 MiB)
    budget = int(gen_cap * 0.9)
    two_core = vmem_cap < (96 << 20)                     # v7x: 2 TCs / chip

    direct = out_dtype == jnp.float32
    use_acc = not direct

    # Tile selection: biggest tm (<= 512) and biggest tn (prefer tn = hidden,
    # i.e. weights resident in VMEM) that fit the budget.
    tm_eff = tn_eff = None
    for tm_try in (512, 384, 256, 128, 64, 32, 16, 8):
        tm_c = _round_up(min(tm_try, _round_up(M, rm)), rm)
        for tn_c in _tn_candidates(hidden):
            if _vmem_bytes(tm_c, tn_c, C, isz, wsz, osz, use_acc) <= budget:
                tm_eff, tn_eff = tm_c, tn_c
                break
        if tm_eff is not None:
            break
    if tm_eff is None:  # pathological shapes: smallest legal tiles
        tm_eff = _round_up(min(M, rm), rm)
        tn_eff = _tn_candidates(hidden)[-1]

    # Keep >= 2 row blocks on 2-TensorCore parts so the second core isn't idle.
    if two_core and M >= 256 and _round_up(M, tm_eff) // tm_eff < 2:
        tm_eff = _round_up((M + 1) // 2, rm)

    M_pad = _round_up(M, tm_eff)
    if M_pad != M:
        x2d = jnp.pad(x2d, ((0, M_pad - M), (0, 0)))

    num_i = M_pad // tm_eff
    num_j = hidden // tn_eff

    b_fc2 = b_fc.reshape(1, hidden)
    b_proj2 = b_proj.reshape(1, C)

    est = _vmem_bytes(tm_eff, tn_eff, C, isz, wsz, osz, use_acc)
    vmem_limit = int(min(gen_cap, max(est + (8 << 20), 24 << 20)))

    # Weights are re-streamed once per row tile unless resident (num_j == 1 ->
    # constant block index -> a single DMA for the whole grid).
    weight_bytes = (w_fc.size + b_fc.size + w_proj.size + b_proj.size) * wsz
    weight_reads = 1 if num_j == 1 else num_i
    cost = pl.CostEstimate(
        flops=4 * M_pad * C * hidden,            # two matmuls, 2 flops/MAC
        transcendentals=M_pad * hidden,          # erf per hidden element
        bytes_accessed=(M_pad * C * isz
                        + weight_reads * weight_bytes
                        + M_pad * C * osz),
    )

    kernel = mlp_kernel_direct if direct else mlp_kernel_acc
    scratch = [] if direct else [pltpu.VMEM((tm_eff, C), jnp.float32)]

    out = pl.pallas_call(
        kernel,
        out_shape=jax.ShapeDtypeStruct((M_pad, C), out_dtype),
        grid_spec=pltpu.PrefetchScalarGridSpec(
            num_scalar_prefetch=0,
            grid=(num_i, num_j),
            in_specs=[
                pl.BlockSpec((tm_eff, C), lambda i, j: (i, 0)),    # x rows
                pl.BlockSpec((C, tn_eff), lambda i, j: (0, j)),    # W_fc slice
                pl.BlockSpec((1, tn_eff), lambda i, j: (0, j)),    # b_fc slice
                pl.BlockSpec((tn_eff, C), lambda i, j: (j, 0)),    # W_proj slice
                pl.BlockSpec((1, C), lambda i, j: (0, 0)),         # b_proj
            ],
            out_specs=pl.BlockSpec((tm_eff, C), lambda i, j: (i, 0)),
            scratch_shapes=scratch,
        ),
        compiler_params=pltpu.CompilerParams(
            dimension_semantics=("parallel", "arbitrary"),
            vmem_limit_bytes=vmem_limit,
        ),
        cost_estimate=cost,
    )(x2d, w_fc, b_fc2, w_proj, b_proj2)

    return out[:M] if M_pad != M else out


def mlp_forward(x, params):
    """x: (batch, seq, n_embed) -> (batch, seq, n_embed)."""
    B, T, C = x.shape
    x2d = x.reshape(B * T, C)
    y2d = mlp_pallas(x2d, params["w_fc"], params["b_fc"],
                     params["w_proj"], params["b_proj"])
    return y2d.reshape(B, T, C)


def init_params(key, n_embed, dtype=jnp.float32):
    k1, k2, k3, k4 = jax.random.split(key, 4)
    hidden = 4 * n_embed
    # PyTorch Linear stores (out, in); we keep weights pre-transposed as (in, out).
    w_fc = jax.random.normal(k1, (n_embed, hidden), dtype) * 0.02
    b_fc = jax.random.normal(k2, (hidden,), dtype) * 0.02
    w_proj = jax.random.normal(k3, (hidden, n_embed), dtype) * 0.02
    b_proj = jax.random.normal(k4, (n_embed,), dtype) * 0.02
    return {"w_fc": w_fc, "b_fc": b_fc, "w_proj": w_proj, "b_proj": b_proj}


def mlp_reference(x, params):
    h = x @ params["w_fc"] + params["b_fc"]
    h = jax.nn.gelu(h, approximate=False)
    return h @ params["w_proj"] + params["b_proj"]


if __name__ == "__main__":
    key = jax.random.PRNGKey(0)
    kx, kp = jax.random.split(key)

    batch, seq, n_embed = 2, 8, 32
    x = jax.random.normal(kx, (batch, seq, n_embed), jnp.float32)
    params = init_params(kp, n_embed)
    y_ref = mlp_reference(x, params)

    # f32 path: accumulates directly into the resident output block.
    y = jax.block_until_ready(mlp_forward(x, params))
    assert y.shape == (batch, seq, n_embed)
    assert jnp.allclose(y, y_ref, atol=1e-5, rtol=1e-5), "f32 mismatch vs reference"

    # bf16 weights/activations path (f32 scratch accumulator, bf16 output).
    xb = x.astype(jnp.bfloat16)
    params_b = {k: v.astype(jnp.bfloat16) for k, v in params.items()}
    yb = jax.block_until_ready(mlp_forward(xb, params_b))
    assert yb.shape == (batch, seq, n_embed)
    assert jnp.allclose(yb.astype(jnp.float32), y_ref, atol=3e-2, rtol=3e-2), \
        "bf16 mismatch vs reference"

    # Moderate shape to exercise multiple row tiles + row padding.
    b2, t2, c2 = 3, 100, 128
    x2 = jax.random.normal(kx, (b2, t2, c2), jnp.float32)
    p2 = init_params(kp, c2)
    y2 = jax.block_until_ready(mlp_forward(x2, p2))
    y2_ref = mlp_reference(x2, p2)
    assert jnp.allclose(y2, y2_ref, atol=2e-3, rtol=2e-3), \
        "multi-tile f32 mismatch vs reference"

    print("KERNEL_OK")
</pallas_src>

<mosaic_0001>
module attributes {stable_mosaic.version = 11 : i64} {
  func.func @mlp_kernel_direct(%arg0: i32, %arg1: i32, %arg2: memref<16x32xf32, #tpu.memory_space<vmem>>, %arg3: memref<32x128xf32, #tpu.memory_space<vmem>>, %arg4: memref<1x128xf32, #tpu.memory_space<vmem>>, %arg5: memref<128x32xf32, #tpu.memory_space<vmem>>, %arg6: memref<1x32xf32, #tpu.memory_space<vmem>>, %arg7: memref<16x32xf32, #tpu.memory_space<vmem>>) attributes {dimension_semantics = [#tpu.dimension_semantics<parallel>, #tpu.dimension_semantics<arbitrary>], iteration_bounds = array<i64: 1, 1>, scalar_prefetch = 0 : i64, scratch_operands = 0 : i64, tpu.core_type = #tpu.core_type<tc>, window_params = [{transform_indices = @transform_0, window_bounds = array<i64: 16, 32>}, {transform_indices = @transform_1, window_bounds = array<i64: 32, 128>}, {transform_indices = @transform_2, window_bounds = array<i64: 1, 128>}, {transform_indices = @transform_3, window_bounds = array<i64: 128, 32>}, {pipeline_mode = #tpu.pipeline_mode<synchronous>, transform_indices = @transform_4, window_bounds = array<i64: 1, 32>}, {transform_indices = @transform_5, window_bounds = array<i64: 16, 32>}]} {
    %c0_i32 = arith.constant 0 : i32
    %0 = arith.cmpi eq, %arg1, %c0_i32 : i32
    %1 = arith.extui %0 : i1 to i32
    %c0_i32_0 = arith.constant 0 : i32
    %2 = arith.cmpi ne, %1, %c0_i32_0 : i32
    scf.if %2 {
      %cst_18 = arith.constant 0.000000e+00 : f32
      %25 = vector.broadcast %cst_18 : f32 to vector<16x32xf32>
      %c0_19 = arith.constant 0 : index
      %c0_20 = arith.constant 0 : index
      %26 = vector.load %arg7[%c0_19, %c0_20] : memref<16x32xf32, #tpu.memory_space<vmem>>, vector<16x32xf32>
      tpu.vector_store %arg7[%c0_19, %c0_20], %25 {strides = array<i32>} : memref<16x32xf32, #tpu.memory_space<vmem>>, vector<16x32xf32>,
    } else {
    }
    %c0 = arith.constant 0 : index
    %c0_1 = arith.constant 0 : index
    %3 = vector.load %arg2[%c0, %c0_1] : memref<16x32xf32, #tpu.memory_space<vmem>>, vector<16x32xf32>
    %c0_2 = arith.constant 0 : index
    %c0_3 = arith.constant 0 : index
    %4 = vector.load %arg3[%c0_2, %c0_3] : memref<32x128xf32, #tpu.memory_space<vmem>>, vector<32x128xf32>
    %cst = arith.constant dense<0.000000e+00> : vector<16x128xf32>
    %5 = tpu.matmul %3, %4, %cst {dimension_numbers = #tpu.dot_dimension_numbers<[1], [0], [0], [1], [0, 0, 1, 1], [], []>} : vector<16x32xf32>, vector<32x128xf32>, vector<16x128xf32> -> vector<16x128xf32>
    %c0_4 = arith.constant 0 : index
    %c0_5 = arith.constant 0 : index
    %6 = vector.load %arg4[%c0_4, %c0_5] : memref<1x128xf32, #tpu.memory_space<vmem>>, vector<1x128xf32>
    %7 = vector.broadcast %6 : vector<1x128xf32> to vector<16x128xf32>
    %8 = arith.addf %5, %7 : vector<16x128xf32>
    %cst_6 = arith.constant 5.000000e-01 : f32
    %9 = vector.broadcast %cst_6 : f32 to vector<16x128xf32>
    %10 = arith.mulf %9, %8 : vector<16x128xf32>
    %cst_7 = arith.constant 0.707106769 : f32
    %11 = vector.broadcast %cst_7 : f32 to vector<16x128xf32>
    %12 = arith.mulf %8, %11 : vector<16x128xf32>
    %13 = math.erf %12 : vector<16x128xf32>
    %cst_8 = arith.constant 1.000000e+00 : f32
    %14 = vector.broadcast %cst_8 : f32 to vector<16x128xf32>
    %15 = arith.addf %14, %13 : vector<16x128xf32>
    %16 = arith.mulf %10, %15 : vector<16x128xf32>
    %c0_9 = arith.constant 0 : index
    %c0_10 = arith.constant 0 : index
    %17 = vector.load %arg7[%c0_9, %c0_10] : memref<16x32xf32, #tpu.memory_space<vmem>>, vector<16x32xf32>
    %c0_11 = arith.constant 0 : index
    %c0_12 = arith.constant 0 : index
    %18 = vector.load %arg5[%c0_11, %c0_12] : memref<128x32xf32, #tpu.memory_space<vmem>>, vector<128x32xf32>
    %cst_13 = arith.constant dense<0.000000e+00> : vector<16x32xf32>
    %19 = tpu.matmul %16, %18, %cst_13 {dimension_numbers = #tpu.dot_dimension_numbers<[1], [0], [0], [1], [0, 0, 1, 1], [], []>} : vector<16x128xf32>, vector<128x32xf32>, vector<16x32xf32> -> vector<16x32xf32>
    %20 = arith.addf %17, %19 : vector<16x32xf32>
    %c0_14 = arith.constant 0 : index
    %c0_15 = arith.constant 0 : index
    %21 = vector.load %arg7[%c0_14, %c0_15] : memref<16x32xf32, #tpu.memory_space<vmem>>, vector<16x32xf32>
    tpu.vector_store %arg7[%c0_14, %c0_15], %20 {strides = array<i32>} : memref<16x32xf32, #tpu.memory_space<vmem>>, vector<16x32xf32>,
    %c0_i32_16 = arith.constant 0 : i32
    %22 = arith.cmpi eq, %arg1, %c0_i32_16 : i32
    %23 = arith.extui %22 : i1 to i32
    %c0_i32_17 = arith.constant 0 : i32
    %24 = arith.cmpi ne, %23, %c0_i32_17 : i32
    scf.if %24 {
      %c0_18 = arith.constant 0 : index
      %c0_19 = arith.constant 0 : index
      %25 = vector.load %arg7[%c0_18, %c0_19] : memref<16x32xf32, #tpu.memory_space<vmem>>, vector<16x32xf32>
      %c0_20 = arith.constant 0 : index
      %c0_21 = arith.constant 0 : index
      %26 = vector.load %arg6[%c0_20, %c0_21] : memref<1x32xf32, #tpu.memory_space<vmem>>, vector<1x32xf32>
      %27 = vector.broadcast %26 : vector<1x32xf32> to vector<16x32xf32>
      %28 = arith.addf %25, %27 : vector<16x32xf32>
      %c0_22 = arith.constant 0 : index
      %c0_23 = arith.constant 0 : index
      %29 = vector.load %arg7[%c0_22, %c0_23] : memref<16x32xf32, #tpu.memory_space<vmem>>, vector<16x32xf32>
      tpu.vector_store %arg7[%c0_22, %c0_23], %28 {strides = array<i32>} : memref<16x32xf32, #tpu.memory_space<vmem>>, vector<16x32xf32>,
    } else {
    }
    return
  }
  func.func @transform_0(%arg0: i32, %arg1: i32) -> (i32, i32) {
    %c0_i32 = arith.constant 0 : i32
    %c0_i32_0 = arith.constant 0 : i32
    return %arg0, %c0_i32 : i32, i32
  }
  func.func @transform_1(%arg0: i32, %arg1: i32) -> (i32, i32) {
    %c0_i32 = arith.constant 0 : i32
    %c0_i32_0 = arith.constant 0 : i32
    return %c0_i32, %arg1 : i32, i32
  }
  func.func @transform_2(%arg0: i32, %arg1: i32) -> (i32, i32) {
    %c0_i32 = arith.constant 0 : i32
    %c0_i32_0 = arith.constant 0 : i32
    return %c0_i32, %arg1 : i32, i32
  }
  func.func @transform_3(%arg0: i32, %arg1: i32) -> (i32, i32) {
    %c0_i32 = arith.constant 0 : i32
    %c0_i32_0 = arith.constant 0 : i32
    return %arg1, %c0_i32 : i32, i32
  }
  func.func @transform_4(%arg0: i32, %arg1: i32) -> (i32, i32) {
    %c0_i32 = arith.constant 0 : i32
    %c0_i32_0 = arith.constant 0 : i32
    %c0_i32_1 = arith.constant 0 : i32
    return %c0_i32, %c0_i32_0 : i32, i32
  }
  func.func @transform_5(%arg0: i32, %arg1: i32) -> (i32, i32) {
    %c0_i32 = arith.constant 0 : i32
    %c0_i32_0 = arith.constant 0 : i32
    return %arg0, %c0_i32 : i32, i32
  }
}

</mosaic_0001>

<bundles_post_ra>
// kernel: tpu_custom_call.1
= control target key start
LH: loop header
LB: loop body
LE: loop exit
PB: predicated region body
PF: predicated region fallthrough
CT: control target
= control target key end

     0   :  { %vm25_vm0 = vcmask 261120   ;;  %s483_s0 = inlined_call_operand.vmem [shape: f32[16,32], index: 0, kind: input, shape index: {}]   ;;  %s484_s1 = inlined_call_operand.vmem [shape: f32[32,128], index: 1, kind: input, shape index: {}]   ;;  %s485_s2 = inlined_call_operand.vmem [shape: f32[1,128], index: 2, kind: input, shape index: {}]   ;;  %s486_s3 = inlined_call_operand.vmem [shape: f32[128,32], index: 3, kind: input, shape index: {}]   ;;  %s487_s4 = inlined_call_operand.vmem [shape: f32[1,32], index: 4, kind: input, shape index: {}]   ;;  %s488_s5 = inlined_call_operand.hbm [shape: f32[16,32], index: 5, kind: output, shape index: {}]  }
   0x1   :  { %v33_v0 = vld [vmem:[%s484_s1 + $0x18] sm:$0xff]  ;;  %v32_v1 = vld [vmem:[%s484_s1 + $0x10] sm:$0xff]  ;;  %v28_v2 = vld [vmem:[%s483_s0] sm:$0xff] }
   0x2   :  { %290 = vmatprep.subr.mxu0 %v33_v0  ;;  %v31_v3 = vld [vmem:[%s484_s1 + $0x8] sm:$0xff]  ;;  %298 = vmatprep.mubr.msk.f32.mxu0 %vm25_vm0, %v28_v2  ;;  %v150_v4 = vld [vmem:[%s486_s3 + $0x78] sm:$0xff]  ;;  %v149_v5 = vld [vmem:[%s486_s3 + $0x70] sm:$0xff] }
   0x3   :  { %291 = vmatpush3.msra.mxu0 %v33_v0  ;;  %301 = vmatprep.subr.mxu1 %v150_v4 }
   0x4   :  { %292 = vmatprep.subr.mxu0 %v32_v1 }
   0x5   :  { %10 = vsyncpa [#allocation3], 0  ;;  %293 = vmatpush3.msra.mxu0 %v32_v1  ;;  %v30_v6 = vld [vmem:[%s484_s1] sm:$0xff]  ;;  %302 = vmatpush3.msra.mxu1 %v150_v4  ;;  %v148_v7 = vld [vmem:[%s486_s3 + $0x68] sm:$0xff]  ;;  %v366_v22 = vmov 0.0   ;;  %s367_s11 = smov [#allocation2]  }
   0x6   :  { %294 = vmatprep.subr.mxu0 %v31_v3  ;;  %303 = vmatprep.subr.mxu1 %v149_v5  ;;  %v29_v8 = vld [vmem:[%s483_s0 + $0x8] sm:$0xff]  ;;  %v147_v9 = vld [vmem:[%s486_s3 + $0x60] sm:$0xff]  ;;  %v146_v10 = vld [vmem:[%s486_s3 + $0x58] sm:$0xff]  ;;  %27 = vst.msk [vmem:[#allocation2 + $0x8] sm:$0xff] %vm25_vm0, %v366_v22  ;;  %s251_s12 = sshll.u32 %s367_s11, 4  ;;  %s252_s12 = int_to_ptr.vmem [resolvable:$true] %s251_s12 }
   0x7   :  { %295 = vmatpush3.msra.mxu0 %v31_v3  ;;  %304 = vmatpush3.msra.mxu1 %v149_v5  ;;  %v145_v11 = vld [vmem:[%s486_s3 + $0x50] sm:$0xff]  ;;  %v144_v12 = vld [vmem:[%s486_s3 + $0x48] sm:$0xff]  ;;  %v143_v13 = vld [vmem:[%s486_s3 + $0x40] sm:$0xff]  ;;  %26 = vst.msk [vmem:[#allocation2] sm:$0xff] %vm25_vm0, %v366_v22  ;;  %s344_s13 = scalar_lea.vmem %s252_s12, 256  ;;  %p349_p1 = scmp.lt.s32.totalorder %s252_s12, %s252_s12 }
   0x8   :  { %296 = vmatprep.subr.mxu0 %v30_v6  ;;  %305 = vmatprep.subr.mxu1 %v148_v7  ;;  %v142_v14 = vld [vmem:[%s486_s3 + $0x38] sm:$0xff]  ;;  %v141_v15 = vld [vmem:[%s486_s3 + $0x30] sm:$0xff]  ;;  %v140_v16 = vld [vmem:[%s486_s3 + $0x28] sm:$0xff]  ;;  %p345_p0 = scmp.ne.s32.totalorder %s252_s12, %s344_s13  ;;  %p350_p2 = scmp.lt.s32.totalorder %s344_s13, %s344_s13 }
   0x9   :  { %297 = vmatpush3.msra.mxu0 %v30_v6  ;;  %306 = vmatpush3.msra.mxu1 %v148_v7  ;;  %v139_v17 = vld [vmem:[%s486_s3 + $0x20] sm:$0xff]  ;;  %v138_v18 = vld [vmem:[%s486_s3 + $0x18] sm:$0xff]  ;;  %v137_v19 = vld [vmem:[%s486_s3 + $0x10] sm:$0xff] }
   0xa   :  { %299 = vmatmul.mubr.msk.f32.vlgmr.msra.gmra.mxu0 %vm25_vm0, %v29_v8  ;;  %307 = vmatprep.subr.mxu1 %v147_v9  ;;  %v136_v20 = vld [vmem:[%s486_s3 + $0x8] sm:$0xff]  ;;  %v135_v21 = vld [vmem:[%s486_s3] sm:$0xff]  ;;  %p351_p3 = por %p350_p2, %p349_p1 }
   0xb   :  { %308 = vmatpush3.msra.mxu1 %v147_v9  ;;  %v262_v23 = vld [vmem:[%s485_s2] ss:$0 sm:$0xff] }
   0xc   :  { %309 = vmatprep.subr.mxu1 %v146_v10  ;;  %v265_v44 = vld [vmem:[%s487_s4] ss:$0 sm:$0xff]  ;;  %p352_p4 = pnand %p351_p3, %p345_p0 }
   0xd   :  { %310 = vmatpush3.msra.mxu1 %v146_v10  ;;  %v134_v38 = vld [vmem:[#allocation2 + $0x8] sm:$0xff] }
   0xe   :  { %311 = vmatprep.subr.mxu1 %v145_v11  ;;  %v133_v40 = vld [vmem:[#allocation2] sm:$0xff] }
   0xf   :  { %312 = vmatpush3.msra.mxu1 %v145_v11 }
  0x10   :  { %313 = vmatprep.subr.mxu1 %v144_v12 }
  0x11   :  { %314 = vmatpush3.msra.mxu1 %v144_v12 }
  0x12   :  { %315 = vmatprep.subr.mxu1 %v143_v13 }
  0x13   :  { %316 = vmatpush3.msra.mxu1 %v143_v13 }
  0x14   :  { %317 = vmatprep.subr.mxu1 %v142_v14 }
  0x15   :  { %318 = vmatpush3.msra.mxu1 %v142_v14 }
  0x16   :  { %319 = vmatprep.subr.mxu1 %v141_v15 }
  0x17   :  { %320 = vmatpush3.msra.mxu1 %v141_v15 }
  0x18   :  { %321 = vmatprep.subr.mxu1 %v140_v16 }
  0x19   :  { %322 = vmatpush3.msra.mxu1 %v140_v16 }
  0x1a   :  { %323 = vmatprep.subr.mxu1 %v139_v17 }
  0x1b   :  { %324 = vmatpush3.msra.mxu1 %v139_v17 }
  0x1c   :  { %325 = vmatprep.subr.mxu1 %v138_v18 }
  0x1d   :  { %326 = vmatpush3.msra.mxu1 %v138_v18 }
  0x1e   :  { %327 = vmatprep.subr.mxu1 %v137_v19 }
  0x1f   :  { %328 = vmatpush3.msra.mxu1 %v137_v19 }
  0x20   :  { %329 = vmatprep.subr.mxu1 %v136_v20 }
  0x21   :  { %330 = vmatpush3.msra.mxu1 %v136_v20 }
  0x22   :  { %331 = vmatprep.subr.mxu1 %v135_v21 }
  0x23   :  { %332 = vmatpush3.msra.mxu1 %v135_v21 }
  0xca   :  { %v300_v24 = vpop.f32.mrf.mxu0 }
  0xcb   :  { %v120_v25 = vadd.f32 %v300_v24, %v262_v23 }
  0xcc   :  { %v114_v26 = vpop.f32.mrf.mxu0 }
  0xcd   :  { %v126_v27 = vmul.f32 0.70710677, %v120_v25  ;;  %v115_v28 = vadd.f32 %v262_v23, %v114_v26  ;;  %v124_v35 = vmul.f32 0.5, %v120_v25 }
  0xcf   :  { %340 = verf.f32 %v126_v27  ;;  %v125_v29 = vmul.f32 0.70710677, %v115_v28  ;;  %v123_v33 = vmul.f32 0.5, %v115_v28 }
  0xd1   :  { %342 = verf.f32 %v125_v29 }
  0xdc   :  { %v341_v30 = vpop.eup %340 }
  0xdd   :  { %v130_v32 = vadd.f32 1.0, %v341_v30 }
  0xde   :  { %v343_v31 = vpop.eup %342 }
  0xdf   :  { %v129_v34 = vadd.f32 1.0, %v343_v31  ;;  %v132_v37 = vmul.f32 %v130_v32, %v124_v35 }
  0xe1   :  { %v131_v36 = vmul.f32 %v129_v34, %v123_v33 }
  0xe3   :  { %333 = vmatprep.mubr.f32.mxu1 %v131_v36 }
  0xe4   :  { %334 = vmatmul.mubr.f32.vlgmr.msra.gmra.mxu1 %v132_v37 }
 0x1a4   :  { %v335_v39 = vpop.f32.mrf.mxu1 }
 0x1a5   :  { %v227_v41 = vadd.f32 %v335_v39, %v134_v38 }
 0x1a6   :  { %v217_v42 = vpop.f32.mrf.mxu1 }
 0x1a7   :  { %229 = vst.msk [vmem:[#allocation2 + $0x8] sm:$0xff] %vm25_vm0, %v227_v41  ;;  %v226_v43 = vadd.f32 %v217_v42, %v133_v40 }
 0x1a9   :  { %228 = vst.msk [vmem:[#allocation2] sm:$0xff] %vm25_vm0, %v226_v43 }
 0x1ae   :  { %v234_v45 = vld [vmem:[#allocation2 + $0x8] sm:$0xff] }
 0x1af   :  { %v243_v46 = vadd.f32 %v265_v44, %v234_v45 }
 0x1b0   :  { %v233_v47 = vld [vmem:[#allocation2] sm:$0xff] }
 0x1b1   :  { %v242_v48 = vadd.f32 %v265_v44, %v233_v47  ;;  %245 = vst.msk [vmem:[#allocation2 + $0x8] sm:$0xff] %vm25_vm0, %v243_v46 }
 0x1b3   :  { %244 = vst.msk [vmem:[#allocation2] sm:$0xff] %vm25_vm0, %v242_v48 }
 0x1b4   :  { %355 = shalt.err (!%p352_p4)
}
 0x1b5   :  { %s368_s0 = smov 128   ;;  %s369_s4 = smov 8  }
 0x1b6   :  { %257 = dma.vmem_to_hbm [thread:$0]  %s252_s12, 256, %s488_s5, [#allocation3], %s368_s0, %s368_s0, %s369_s4  }
 0x1b7   :  { %364 = dma.done.wait [#allocation3], 256  }
 0x1b8   :  { %365 = vsyncadd [#allocation3], 4294967040 }
 0x1b9   :  { %261 = vsyncpa [#allocation3], 1 }

</bundles_post_ra>
